<compile_context>
chip_gen: v7x
topology: tpu7x:2x2x1
jax: 0.10.0
libtpu: 0.0.40
codegen_flags: <defaults>
</compile_context>

<pallas_src>
import functools

import jax
import jax.numpy as jnp
from jax.experimental import pallas as pl
from jax.experimental.pallas import tpu as pltpu

QMIN = -128.0
QMAX = 127.0
_F32 = jnp.float32


def _round_up(x: int, m: int) -> int:
    return (x + m - 1) // m * m


def _pick_tile(dim: int, target: int, align: int) -> int:
    """Largest multiple of `align` that divides `dim` and is <= max(target, align).

    `dim` must already be a multiple of `align` (it is, post-padding)."""
    target = max(target, align)
    best = align
    for t in range(align, min(dim, target) + 1, align):
        if dim % t == 0:
            best = t
    return best


def qlinear_kernel(x_ref, w_ref, b_ref, s_ref, o_ref, acc_ref):
    """One (TM, TN) output tile; grid axis 2 (K) is the reduction axis."""
    k = pl.program_id(2)

    @pl.when(k == 0)
    def _():
        acc_ref[...] = jnp.zeros_like(acc_ref)

    # Pure MXU work in the hot loop: (TM, TK) . (TK, TN) with f32 accumulation.
    # The RHS holds the integer quant codes (already lane-dense, pre-transposed).
    acc_ref[...] += jnp.dot(x_ref[...], w_ref[...],
                            preferred_element_type=jnp.float32)

    @pl.when(k == pl.num_programs(2) - 1)
    def _():
        # Global per-tensor scale folded into the epilogue (exact, since the
        # scale is per-tensor: (x . q) * scale == x . (q * scale)), then bias.
        # If scale == 0 the weight was all-zero and the output is just bias,
        # matching the reference fake-quant exactly.
        o_ref[...] = (acc_ref[...] * s_ref[0] + b_ref[...]).astype(o_ref.dtype)


@functools.partial(jax.jit, static_argnames=("tm", "tn", "tk", "compute_dtype"))
def qlinear(x, weight, bias, *, tm=1024, tn=512, tk=1024,
            compute_dtype=jnp.bfloat16):
    """Fake-quantized linear: x @ fake_quant(weight).T + bias.

    x: (..., K), weight: (N, K), bias: (N,) -> (..., N).
    """
    *lead, K = x.shape
    N, K2 = weight.shape
    assert K == K2, "in_features mismatch"
    x2d = x.reshape(-1, K)
    M = x2d.shape[0]

    # ---- Per-tensor symmetric fake-quant of the weight, ONCE in the wrapper
    # (never re-done per tile inside the hot loop). For static inference
    # weights, (q_t, scale) can be cached by the caller to skip these passes.
    w32 = weight.astype(_F32)
    max_abs = jnp.max(jnp.abs(w32))
    scale = (max_abs / ((QMAX - QMIN) / 2.0)).astype(_F32)
    safe = jnp.where(scale > 0.0, scale, 1.0)           # guard all-zero weight
    q = jnp.clip(jnp.round(w32 / safe), QMIN, QMAX)      # integer codes
    # (K, N) lane-dense MXU RHS. Codes in [-128,127] are exact in bf16, so
    # compact storage halves weight HBM traffic without changing the result.
    q_t = q.T.astype(compute_dtype)

    # ---- Pad only to (8, 128) hardware alignment (no tile-induced waste).
    Mp = _round_up(M, 8)
    Np = _round_up(N, 128)
    Kp = _round_up(K, 128)

    # ---- Divisor-aware tile selection; grow tm toward the full batch first
    # so the (large) weight streams from HBM exactly once.
    tm_ = _pick_tile(Mp, tm, 8)
    tn_ = _pick_tile(Np, tn, 128)
    tk_ = _pick_tile(Kp, tk, 128)

    xb = jnp.dtype(compute_dtype).itemsize
    ob = jnp.dtype(x.dtype).itemsize

    def ws_bytes(a, b, c):
        # double-buffered x / w / bias / out tiles + resident f32 accumulator
        return 2 * (a * c * xb + c * b * xb + b * 4 + a * b * ob) + a * b * 4

    budget = 40 * 1024 * 1024          # per-core budget; v7x has 64 MiB per TC
    while ws_bytes(tm_, tn_, tk_) > budget and (tk_ > 128 or tn_ > 128 or tm_ > 8):
        if tk_ > 128:
            tk_ = _pick_tile(Kp, tk_ // 2, 128)
        elif tn_ > 128:
            tn_ = _pick_tile(Np, tn_ // 2, 128)
        else:
            tm_ = _pick_tile(Mp, tm_ // 2, 8)

    # ---- Pad + cast (XLA fuses these into single passes over each array).
    x_p = jnp.pad(x2d, ((0, Mp - M), (0, Kp - K))).astype(compute_dtype)
    w_p = jnp.pad(q_t, ((0, Kp - K), (0, Np - N)))
    b_p = jnp.pad(bias.astype(_F32), (0, Np - N)).reshape(1, Np)
    s_p = scale.reshape(1)             # scalar scale -> SMEM

    grid = (Mp // tm_, Np // tn_, Kp // tk_)

    vmem_limit = int(min(48 * 1024 * 1024,
                         max(32 * 1024 * 1024, 2 * ws_bytes(tm_, tn_, tk_))))

    out = pl.pallas_call(
        qlinear_kernel,
        out_shape=jax.ShapeDtypeStruct((Mp, Np), x.dtype),
        grid_spec=pltpu.PrefetchScalarGridSpec(
            num_scalar_prefetch=0,
            grid=grid,
            in_specs=[
                pl.BlockSpec((tm_, tk_), lambda i, j, k: (i, k)),    # x tile
                pl.BlockSpec((tk_, tn_), lambda i, j, k: (k, j)),    # q^T tile
                pl.BlockSpec((1, tn_), lambda i, j, k: (0, j)),      # bias tile
                pl.BlockSpec(memory_space=pltpu.MemorySpace.SMEM),   # scale scalar
            ],
            out_specs=pl.BlockSpec((tm_, tn_), lambda i, j, k: (i, j)),
            scratch_shapes=[pltpu.VMEM((tm_, tn_), jnp.float32)],
        ),
        compiler_params=pltpu.CompilerParams(
            dimension_semantics=("parallel", "parallel", "arbitrary"),
            vmem_limit_bytes=vmem_limit,
        ),
        cost_estimate=pl.CostEstimate(
            flops=2 * Mp * Np * Kp,
            transcendentals=0,
            # account for x / weight refetches across the N / M grid axes
            bytes_accessed=(Mp * Kp * xb) * (Np // tn_)
                           + (Kp * Np * xb) * (Mp // tm_)
                           + Mp * Np * ob + Np * 4,
        ),
    )(x_p, w_p, b_p, s_p)

    return out[:M, :N].reshape(*lead, N)


def qlinear_ref(x, weight, bias):
    """Pure-JAX reference faithful to the PyTorch module (f32 throughout)."""
    w32 = weight.astype(_F32)
    max_abs = jnp.max(jnp.abs(w32))
    scale = max_abs / ((QMAX - QMIN) / 2.0)
    safe = jnp.where(scale > 0.0, scale, 1.0)
    w_q = jnp.clip(jnp.round(w32 / safe), QMIN, QMAX) * scale   # scale==0 -> w_q==0
    return jnp.dot(x, w_q.T, precision=jax.lax.Precision.HIGHEST) + bias[None, :]


if __name__ == "__main__":
    key = jax.random.PRNGKey(0)
    k1, k2, k3, k4, k5, k6 = jax.random.split(key, 6)

    # --- Small shape consistent with the module: (batch, in_features) input.
    batch, in_features, out_features = 8, 32, 16
    x = jax.random.normal(k1, (batch, in_features), dtype=jnp.float32)
    w = jax.random.normal(k2, (out_features, in_features), dtype=jnp.float32) * 0.1
    b = jax.random.normal(k3, (out_features,), dtype=jnp.float32) * 0.01

    ref = qlinear_ref(x, w, b)
    out_bf16 = jax.block_until_ready(qlinear(x, w, b))                 # bf16 MXU path
    assert out_bf16.shape == (batch, out_features)
    assert jnp.allclose(out_bf16, ref, atol=2e-2, rtol=2e-2), "small/bf16 mismatch"

    out_f32 = jax.block_until_ready(qlinear(x, w, b, compute_dtype=jnp.float32))
    assert jnp.allclose(out_f32, ref, atol=5e-3, rtol=5e-3), "small/f32 mismatch"

    # --- Larger, non-power-of-two shape: exercises padding to (8,128),
    # divisor-aware tiles (tk=640, tn=384) and the accumulator/epilogue path.
    M2, K2, N2 = 128, 640, 384
    x2 = jax.random.normal(k4, (M2, K2), dtype=jnp.float32)
    w2 = jax.random.normal(k5, (N2, K2), dtype=jnp.float32) * 0.05
    b2 = jax.random.normal(k6, (N2,), dtype=jnp.float32) * 0.01

    ref2 = qlinear_ref(x2, w2, b2)
    out2_bf16 = jax.block_until_ready(qlinear(x2, w2, b2))
    assert out2_bf16.shape == (M2, N2)
    assert jnp.allclose(out2_bf16, ref2, atol=2e-2, rtol=2e-2), "tiled/bf16 mismatch"

    out2_f32 = jax.block_until_ready(qlinear(x2, w2, b2, compute_dtype=jnp.float32))
    assert jnp.allclose(out2_f32, ref2, atol=5e-3, rtol=5e-3), "tiled/f32 mismatch"

    print("KERNEL_OK")
</pallas_src>

<mosaic_0001>
module attributes {stable_mosaic.version = 11 : i64} {
  func.func @qlinear_kernel(%arg0: i32, %arg1: i32, %arg2: i32, %arg3: memref<8x128xbf16, #tpu.memory_space<vmem>>, %arg4: memref<128x128xbf16, #tpu.memory_space<vmem>>, %arg5: memref<1x128xf32, #tpu.memory_space<vmem>>, %arg6: memref<1xf32, #tpu.memory_space<smem>>, %arg7: memref<8x128xf32, #tpu.memory_space<vmem>>, %arg8: memref<8x128xf32, #tpu.memory_space<vmem>>) attributes {dimension_semantics = [#tpu.dimension_semantics<parallel>, #tpu.dimension_semantics<parallel>, #tpu.dimension_semantics<arbitrary>], iteration_bounds = array<i64: 1, 1, 1>, scalar_prefetch = 0 : i64, scratch_operands = 1 : i64, tpu.core_type = #tpu.core_type<tc>, window_params = [{transform_indices = @transform_0, window_bounds = array<i64: 8, 128>}, {transform_indices = @transform_1, window_bounds = array<i64: 128, 128>}, {transform_indices = @transform_2, window_bounds = array<i64: 1, 128>}, {transform_indices = @transform_3, window_bounds = array<i64: 1>}, {transform_indices = @transform_4, window_bounds = array<i64: 8, 128>}]} {
    %c0_i32 = arith.constant 0 : i32
    %0 = arith.cmpi eq, %arg2, %c0_i32 : i32
    %1 = arith.extui %0 : i1 to i32
    %c0_i32_0 = arith.constant 0 : i32
    %2 = arith.cmpi ne, %1, %c0_i32_0 : i32
    scf.if %2 {
      %cst_10 = arith.constant 0.000000e+00 : f32
      %12 = vector.broadcast %cst_10 : f32 to vector<8x128xf32>
      %c0_11 = arith.constant 0 : index
      %c0_12 = arith.constant 0 : index
      %13 = vector.load %arg8[%c0_11, %c0_12] : memref<8x128xf32, #tpu.memory_space<vmem>>, vector<8x128xf32>
      tpu.vector_store %arg8[%c0_11, %c0_12], %12 {strides = array<i32>} : memref<8x128xf32, #tpu.memory_space<vmem>>, vector<8x128xf32>,
    } else {
    }
    %c0 = arith.constant 0 : index
    %c0_1 = arith.constant 0 : index
    %3 = vector.load %arg8[%c0, %c0_1] : memref<8x128xf32, #tpu.memory_space<vmem>>, vector<8x128xf32>
    %c0_2 = arith.constant 0 : index
    %c0_3 = arith.constant 0 : index
    %4 = vector.load %arg3[%c0_2, %c0_3] : memref<8x128xbf16, #tpu.memory_space<vmem>>, vector<8x128xbf16>
    %c0_4 = arith.constant 0 : index
    %c0_5 = arith.constant 0 : index
    %5 = vector.load %arg4[%c0_4, %c0_5] : memref<128x128xbf16, #tpu.memory_space<vmem>>, vector<128x128xbf16>
    %cst = arith.constant dense<0.000000e+00> : vector<8x128xf32>
    %6 = tpu.matmul %4, %5, %cst {dimension_numbers = #tpu.dot_dimension_numbers<[1], [0], [0], [1], [0, 0, 1, 1], [], []>} : vector<8x128xbf16>, vector<128x128xbf16>, vector<8x128xf32> -> vector<8x128xf32>
    %7 = arith.addf %3, %6 : vector<8x128xf32>
    %c0_6 = arith.constant 0 : index
    %c0_7 = arith.constant 0 : index
    %8 = vector.load %arg8[%c0_6, %c0_7] : memref<8x128xf32, #tpu.memory_space<vmem>>, vector<8x128xf32>
    tpu.vector_store %arg8[%c0_6, %c0_7], %7 {strides = array<i32>} : memref<8x128xf32, #tpu.memory_space<vmem>>, vector<8x128xf32>,
    %c0_i32_8 = arith.constant 0 : i32
    %9 = arith.cmpi eq, %arg2, %c0_i32_8 : i32
    %10 = arith.extui %9 : i1 to i32
    %c0_i32_9 = arith.constant 0 : i32
    %11 = arith.cmpi ne, %10, %c0_i32_9 : i32
    scf.if %11 {
      %c0_10 = arith.constant 0 : index
      %c0_11 = arith.constant 0 : index
      %12 = vector.load %arg8[%c0_10, %c0_11] : memref<8x128xf32, #tpu.memory_space<vmem>>, vector<8x128xf32>
      %c0_12 = arith.constant 0 : index
      %13 = memref.load %arg6[%c0_12] : memref<1xf32, #tpu.memory_space<smem>>
      %14 = vector.broadcast %13 : f32 to vector<8x128xf32>
      %15 = arith.mulf %12, %14 : vector<8x128xf32>
      %c0_13 = arith.constant 0 : index
      %c0_14 = arith.constant 0 : index
      %16 = vector.load %arg5[%c0_13, %c0_14] : memref<1x128xf32, #tpu.memory_space<vmem>>, vector<1x128xf32>
      %17 = vector.broadcast %16 : vector<1x128xf32> to vector<8x128xf32>
      %18 = arith.addf %15, %17 : vector<8x128xf32>
      %c0_15 = arith.constant 0 : index
      %c0_16 = arith.constant 0 : index
      %19 = vector.load %arg7[%c0_15, %c0_16] : memref<8x128xf32, #tpu.memory_space<vmem>>, vector<8x128xf32>
      tpu.vector_store %arg7[%c0_15, %c0_16], %18 {strides = array<i32>} : memref<8x128xf32, #tpu.memory_space<vmem>>, vector<8x128xf32>,
    } else {
    }
    return
  }
  func.func @transform_0(%arg0: i32, %arg1: i32, %arg2: i32) -> (i32, i32) {
    %c0_i32 = arith.constant 0 : i32
    return %arg0, %arg2 : i32, i32
  }
  func.func @transform_1(%arg0: i32, %arg1: i32, %arg2: i32) -> (i32, i32) {
    %c0_i32 = arith.constant 0 : i32
    return %arg2, %arg1 : i32, i32
  }
  func.func @transform_2(%arg0: i32, %arg1: i32, %arg2: i32) -> (i32, i32) {
    %c0_i32 = arith.constant 0 : i32
    %c0_i32_0 = arith.constant 0 : i32
    return %c0_i32, %arg1 : i32, i32
  }
  func.func @transform_3(%arg0: i32, %arg1: i32, %arg2: i32) -> i32 {
    %c0_i32 = arith.constant 0 : i32
    %c0_i32_0 = arith.constant 0 : i32
    return %c0_i32 : i32
  }
  func.func @transform_4(%arg0: i32, %arg1: i32, %arg2: i32) -> (i32, i32) {
    %c0_i32 = arith.constant 0 : i32
    return %arg0, %arg1 : i32, i32
  }
}

</mosaic_0001>

<bundles_post_ra>
// kernel: qlinear.1
= control target key start
LH: loop header
LB: loop body
LE: loop exit
PB: predicated region body
PF: predicated region fallthrough
CT: control target
= control target key end

     0   :  { %v236_v1 = vmov 0.0   ;;  %vm237_vm0 = vmmov 0   ;;  %s309_s0 = inlined_call_operand.vmem [shape: bf16[8,128], index: 0, kind: input, shape index: {}]   ;;  %s310_s1 = inlined_call_operand.vmem [shape: bf16[128,128], index: 1, kind: input, shape index: {}]   ;;  %s311_s2 = inlined_call_operand.vmem [shape: f32[1,128], index: 2, kind: input, shape index: {}]   ;;  %s312_s3 = inlined_call_operand.<no memory space> [shape: f32[1], index: 3, kind: input, shape index: {}]   ;;  %s313_s4 = inlined_call_operand.hbm [shape: f32[8,128], index: 4, kind: output, shape index: {}]  }
   0x1   :  { %v204_v0 = vld [vmem:[%s310_s1] sm:$0xff]   ;;  %181 = vmatprep.subr.bf16.mxu0 %v236_v1  ;;  %v205_v2 = vld [vmem:[%s310_s1 + $0x8] sm:$0xff]   ;;  %197 = vmatprep.mubr.msk.bf16.mxu0 %vm237_vm0, %v236_v1  ;;  %v206_v3 = vld [vmem:[%s310_s1 + $0x10] sm:$0xff]  }
   0x2   :  { %182 = vmatpush3.bf16.msra.mxu0 %v204_v0 }
   0x3   :  { %183 = vmatprep.subr.bf16.mxu0 %v236_v1 }
   0x6   :  { %184 = vmatpush3.bf16.msra.mxu0 %v205_v2 }
   0x7   :  { %185 = vmatprep.subr.bf16.mxu0 %v236_v1 }
   0x8   :  { %10 = vsyncpa [#allocation5], 0  ;;  %v207_v4 = vld [vmem:[%s310_s1 + $0x18] sm:$0xff]   ;;  %v208_v5 = vld [vmem:[%s310_s1 + $0x20] sm:$0xff]   ;;  %v138_v10 = vstv %s312_s3  ;;  %s238_s11 = smov [#allocation4]  }
   0x9   :  { %v209_v6 = vld [vmem:[%s310_s1 + $0x28] sm:$0xff]   ;;  %v210_v7 = vld [vmem:[%s310_s1 + $0x30] sm:$0xff]   ;;  %v211_v8 = vld [vmem:[%s310_s1 + $0x38] sm:$0xff]   ;;  %s155_s12 = sshll.u32 %s238_s11, 4  ;;  %s156_s12 = int_to_ptr.vmem [resolvable:$true] %s155_s12 }
   0xa   :  { %186 = vmatpush3.bf16.msra.mxu0 %v206_v3  ;;  %v26_v9 = vld [vmem:[%s309_s0] sm:$0xf]  ;;  %s212_s0 = scalar_lea.vmem %s156_s12, 128  ;;  %p217_p1 = scmp.lt.s32.totalorder %s156_s12, %s156_s12 }
   0xb   :  { %187 = vmatprep.subr.bf16.mxu0 %v236_v1  ;;  %v171_v12 = vld [vmem:[%s311_s2] ss:$0 sm:$0xff]  ;;  %p213_p0 = scmp.ne.s32.totalorder %s156_s12, %s212_s0  ;;  %p218_p2 = scmp.lt.s32.totalorder %s212_s0, %s212_s0 }
   0xd   :  { %p219_p3 = por %p218_p2, %p217_p1 }
   0xe   :  { %188 = vmatpush3.bf16.msra.mxu0 %v207_v4 }
   0xf   :  { %189 = vmatprep.subr.bf16.mxu0 %v236_v1  ;;  %p220_p4 = pnand %p219_p3, %p213_p0 }
  0x12   :  { %190 = vmatpush3.bf16.msra.mxu0 %v208_v5 }
  0x13   :  { %191 = vmatprep.subr.bf16.mxu0 %v236_v1 }
  0x16   :  { %192 = vmatpush3.bf16.msra.mxu0 %v209_v6 }
  0x17   :  { %193 = vmatprep.subr.bf16.mxu0 %v236_v1 }
  0x1a   :  { %194 = vmatpush3.bf16.msra.mxu0 %v210_v7 }
  0x1b   :  { %195 = vmatprep.subr.bf16.mxu0 %v236_v1 }
  0x1e   :  { %196 = vmatpush3.bf16.msra.mxu0 %v211_v8 }
  0x21   :  { %198 = vmatmul.mubr.bf16.vlgmr.msra.gmra.mrb[0].mxu0 %v26_v9 }
  0xf4   :  { %v125_v11 = vpop.f32.mrb[0].mxu0 }
  0xf5   :  { %v139_v13 = vmul.f32 %v138_v10, %v125_v11  ;;  %v199_v14 = vpop.f32.mrb[1].mxu0 }
  0xf6   :  { %v128_v15 = vpop.f32.mrb[2].mxu0 }
  0xf7   :  { %v200_v16 = vpop.f32.mrb[3].mxu0  ;;  %v147_v17 = vadd.f32 %v171_v12, %v139_v13 }
  0xf9   :  { %148 = vst [vmem:[#allocation4] sm:$0xff] %v147_v17 }
  0xfa   :  { %223 = shalt.err (!%p220_p4)
}
  0xfb   :  { %s224_s2 = scalar_lea.hbm %s313_s4, 128 }
  0xfc   :  { %p225_p5 = scmp.ne.s32.totalorder %s313_s4, %s224_s2  ;;  %p228_p6 = scmp.lt.u32.totalorder %s224_s2, %s313_s4 }
  0xfe   :  { %p230_p7 = pnand %p228_p6, %p225_p5 }
 0x100   :  { %233 = shalt.err (!%p230_p7)
}
 0x101   :  { %158 = dma.vmem_to_hbm [thread:$0]  %s156_s12, 128, %s313_s4, [#allocation5]  }
 0x102   :  { %234 = dma.done.wait [#allocation5], 128  }
 0x103   :  { %235 = vsyncadd [#allocation5], 4294967168 }
 0x104   :  { %162 = vsyncpa [#allocation5], 1 }

</bundles_post_ra>
